<compile_context>
chip_gen: v5e
topology: v5e:2x2
jax: 0.10.0
libtpu: 0.0.40
codegen_flags: <defaults>
</compile_context>

<pallas_src>
import functools

import numpy as np
import jax
import jax.numpy as jnp
from jax import lax
from jax.experimental import pallas as pl
from jax.experimental.pallas import tpu as pltpu


def _reflect_avgpool_matrix(n, kernel=7):
    """M[j, i] = weight of source index j for pooled output i, for a 1-D
    average pool (size `kernel`, stride 1) with reflection padding of
    kernel//2 on both sides (PyTorch ReflectionPad semantics)."""
    pad = kernel // 2
    m = np.zeros((n, n), dtype=np.float32)
    inv_k = 1.0 / float(kernel)
    for i in range(n):
        for d in range(-pad, pad + 1):
            j = i + d
            if j < 0:
                j = -j                      # reflect (edge not repeated)
            elif j > n - 1:
                j = 2 * (n - 1) - j
            m[j, i] += inv_k
    return m


def _fsa_kernel(p_ref, x_ref, mh_ref, mv_ref, o_ref, *, tc, h, w, flat_h):
    """One (tc, H, W) block of the (B*C, H, W) view.

    p_ref : (5, tc, 1, 1) f32 folded per-channel scalars
            [hh+1, hl-hh-1, gamma*(vh+1), gamma*(vl-vh-1), beta]
    mh_ref: (W, W) f32 horizontal pooling matrix (source-major: x @ mh)
    mv_ref: (H, H) f32 vertical pooling matrix   (output-major: mv @ y)
    """
    xf = x_ref[...].astype(jnp.float32)        # (tc, H, W); no-op for f32 input
    mh = mh_ref[...]
    mv = mv_ref[...]

    # Folded per-channel scalars, already shaped (tc, 1, 1) for broadcasting.
    a = p_ref[0]        # hori_high + 1
    bb = p_ref[1]       # hori_low - hori_high - 1
    g1 = p_ref[2]       # gamma * (vert_high + 1)
    g2 = p_ref[3]       # gamma * (vert_low - vert_high - 1)
    bt = p_ref[4]       # beta

    # ---- horizontal reflect-pad average pool (contracts W) on the MXU ----
    if flat_h:
        # Free reshape (H % 8 == 0): one well-shaped (tc*H, W) @ (W, W) matmul.
        hori_l = jnp.dot(xf.reshape(tc * h, w), mh,
                         preferred_element_type=jnp.float32).reshape(tc, h, w)
    else:
        # Avoid a sublane relayout: batched matmul over the channel dim.
        mh_b = jnp.broadcast_to(mh, (tc, w, w))
        hori_l = lax.dot_general(
            xf, mh_b,
            dimension_numbers=(((2,), (1,)), ((0,), (0,))),
            preferred_element_type=jnp.float32)

    hori_out = a * xf + bb * hori_l            # == hl*hori_l + (hh+1)*(x-hori_l)

    # ---- vertical reflect-pad average pool (contracts H), batched ----
    mv_b = jnp.broadcast_to(mv, (tc, h, h))
    vert_l = lax.dot_general(
        mv_b, hori_out,
        dimension_numbers=(((2,), (1,)), ((0,), (0,))),
        preferred_element_type=jnp.float32)

    # out = beta*x + gamma*(vh+1)*hori_out + gamma*(vl-vh-1)*vert_l
    out = bt * xf + g1 * hori_out + g2 * vert_l
    o_ref[...] = out.astype(o_ref.dtype)


_TARGET_STREAM_BYTES = 4 * 1024 * 1024   # ~4 MiB of streamed in+out per grid step


def _vmem_limit_bytes():
    """Per-generation scoped-VMEM limit (v7x: 64 MiB physical -> ~48 MiB;
    v5e/v6e: 128 MiB physical -> ~96 MiB)."""
    try:
        cap = int(pltpu.get_tpu_info().vmem_capacity_bytes)
    except Exception:
        cap = 64 * 1024 * 1024           # conservative fallback (v7x per-core)
    return min((cap * 3) // 4, 100 * 1024 * 1024)


def frequency_strip_attention(x, params, *, kernel=7):
    """x: (B, C, H, W). params: (C, 6) f32 columns
       [hori_low, hori_high, vert_low, vert_high, gamma, beta]."""
    b, c, h, w = x.shape
    assert params.shape == (c, 6)
    pad = kernel // 2
    assert h > pad and w > pad, "reflection pad needs spatial dims > kernel//2"

    n = b * c
    itemsize = x.dtype.itemsize
    flat_h = (h % 8 == 0)

    mh = jnp.asarray(_reflect_avgpool_matrix(w, kernel))        # (W, W)
    mv = jnp.asarray(_reflect_avgpool_matrix(h, kernel).T)      # (H, H)

    # ---- fold the per-channel scalar algebra once, wrapper-side ----
    pf = params.astype(jnp.float32)
    hl, hh, vl, vh, g, bt = (pf[:, k] for k in range(6))
    folded = jnp.stack([hh + 1.0,
                        hl - hh - 1.0,
                        g * (vh + 1.0),
                        g * (vl - vh - 1.0),
                        bt], axis=0)                            # (5, C)
    # Flat index of the (B*C) view is bi*C + ci -> repeat channels B times.
    folded = jnp.tile(folded, (1, b)).reshape(5, n, 1, 1)       # (5, N, 1, 1)

    # ---- byte-based tile selection against the per-generation VMEM budget ----
    vmem_limit = _vmem_limit_bytes()
    budget = int(vmem_limit * 0.85)

    def footprint(tcand):
        stream = tcand * h * w * itemsize * 2 * 2               # in+out, 2 buffers each
        interm = tcand * h * w * 4 * 6                          # f32 temporaries
        bcast = tcand * h * h * 4 + (0 if flat_h else tcand * w * w * 4)
        consts = (h * h + w * w) * 4 * 2                        # mh, mv (double-buffered)
        prm = 5 * tcand * 4096 * 2                              # padded (1,1) param tiles
        return stream + interm + bcast + consts + prm

    per_ch_stream = h * w * itemsize * 2
    tc_target = max(1, _TARGET_STREAM_BYTES // per_ch_stream)
    divisors = [d for d in range(1, n + 1) if n % d == 0]
    fitting = [d for d in divisors if footprint(d) <= budget]
    if not fitting:
        raise ValueError(f"single-channel (H={h}, W={w}) block exceeds the VMEM budget")
    cands = [d for d in fitting if d <= tc_target]
    tc = max(cands) if cands else min(fitting)

    x3 = x.reshape(n, h, w)                                      # free leading-dim merge

    cost = pl.CostEstimate(
        flops=2 * n * h * w * (h + w) + 8 * n * h * w,
        transcendentals=0,
        bytes_accessed=n * h * w * itemsize * 2 + n * 5 * 4 + (h * h + w * w) * 4,
    )

    kernel_fn = functools.partial(_fsa_kernel, tc=tc, h=h, w=w, flat_h=flat_h)

    out3 = pl.pallas_call(
        kernel_fn,
        out_shape=jax.ShapeDtypeStruct((n, h, w), x.dtype),
        grid=(n // tc,),
        in_specs=[
            pl.BlockSpec((5, tc, 1, 1), lambda i: (0, i, 0, 0)),   # folded params
            pl.BlockSpec((tc, h, w), lambda i: (i, 0, 0)),         # x block
            pl.BlockSpec((w, w), lambda i: (0, 0)),                # mh (resident)
            pl.BlockSpec((h, h), lambda i: (0, 0)),                # mv (resident)
        ],
        out_specs=pl.BlockSpec((tc, h, w), lambda i: (i, 0, 0)),
        compiler_params=pltpu.CompilerParams(
            dimension_semantics=("parallel",),
            vmem_limit_bytes=vmem_limit,
        ),
        cost_estimate=cost,
    )(folded, x3, mh, mv)

    return out3.reshape(b, c, h, w)


def frequency_strip_attention_ref(x, params, kernel=7):
    """Pure-JAX reference matching the PyTorch module."""
    pad = kernel // 2
    hl = params[:, 0].reshape(1, -1, 1, 1)
    hh = params[:, 1].reshape(1, -1, 1, 1)
    vl = params[:, 2].reshape(1, -1, 1, 1)
    vh = params[:, 3].reshape(1, -1, 1, 1)
    g = params[:, 4].reshape(1, -1, 1, 1)
    bt = params[:, 5].reshape(1, -1, 1, 1)
    hgt, wid = x.shape[-2], x.shape[-1]

    x1 = jnp.pad(x, ((0, 0), (0, 0), (0, 0), (pad, pad)), mode="reflect")
    hori_l = sum(x1[..., d:d + wid] for d in range(kernel)) / kernel
    hori_h = x - hori_l
    hori_out = hl * hori_l + (hh + 1.0) * hori_h

    h2 = jnp.pad(hori_out, ((0, 0), (0, 0), (pad, pad), (0, 0)), mode="reflect")
    vert_l = sum(h2[..., d:d + hgt, :] for d in range(kernel)) / kernel
    vert_h = hori_out - vert_l
    vert_out = vl * vert_l + (vh + 1.0) * vert_h

    return x * bt + vert_out * g


if __name__ == "__main__":
    key = jax.random.PRNGKey(0)
    kx, kp = jax.random.split(key)
    B, C, H, W = 2, 4, 16, 16
    x = jax.random.normal(kx, (B, C, H, W), dtype=jnp.float32)
    # Module default init (zeros/ones) makes forward == identity; use random
    # per-channel parameters so the test actually exercises the math.
    params = 0.5 * jax.random.normal(kp, (C, 6), dtype=jnp.float32)

    out = frequency_strip_attention(x, params)
    out = jax.block_until_ready(out)

    ref = frequency_strip_attention_ref(x, params)
    assert out.shape == ref.shape and out.dtype == ref.dtype
    assert jnp.allclose(out, ref, atol=1e-4, rtol=1e-4), float(
        jnp.max(jnp.abs(out - ref)))

    print("KERNEL_OK")
</pallas_src>

<mosaic_0001>
module attributes {stable_mosaic.version = 11 : i64} {
  func.func @_fsa_kernel(%arg0: i32, %arg1: memref<5x8x1x1xf32, #tpu.memory_space<vmem>>, %arg2: memref<8x16x16xf32, #tpu.memory_space<vmem>>, %arg3: memref<16x16xf32, #tpu.memory_space<vmem>>, %arg4: memref<16x16xf32, #tpu.memory_space<vmem>>, %arg5: memref<8x16x16xf32, #tpu.memory_space<vmem>>) attributes {dimension_semantics = [#tpu.dimension_semantics<parallel>], iteration_bounds = array<i64: 1>, scalar_prefetch = 0 : i64, scratch_operands = 0 : i64, tpu.core_type = #tpu.core_type<tc>, window_params = [{transform_indices = @transform_0, window_bounds = array<i64: 5, 8, 1, 1>}, {transform_indices = @transform_1, window_bounds = array<i64: 8, 16, 16>}, {pipeline_mode = #tpu.pipeline_mode<synchronous>, transform_indices = @transform_2, window_bounds = array<i64: 16, 16>}, {pipeline_mode = #tpu.pipeline_mode<synchronous>, transform_indices = @transform_3, window_bounds = array<i64: 16, 16>}, {transform_indices = @transform_4, window_bounds = array<i64: 8, 16, 16>}]} {
    %c0 = arith.constant 0 : index
    %c0_0 = arith.constant 0 : index
    %c0_1 = arith.constant 0 : index
    %0 = vector.load %arg2[%c0, %c0_0, %c0_1] : memref<8x16x16xf32, #tpu.memory_space<vmem>>, vector<8x16x16xf32>
    %c0_2 = arith.constant 0 : index
    %c0_3 = arith.constant 0 : index
    %1 = vector.load %arg3[%c0_2, %c0_3] : memref<16x16xf32, #tpu.memory_space<vmem>>, vector<16x16xf32>
    %c0_4 = arith.constant 0 : index
    %c0_5 = arith.constant 0 : index
    %2 = vector.load %arg4[%c0_4, %c0_5] : memref<16x16xf32, #tpu.memory_space<vmem>>, vector<16x16xf32>
    %c0_6 = arith.constant 0 : index
    %c0_7 = arith.constant 0 : index
    %c0_8 = arith.constant 0 : index
    %c0_9 = arith.constant 0 : index
    %3 = vector.load %arg1[%c0_6, %c0_7, %c0_8, %c0_9] : memref<5x8x1x1xf32, #tpu.memory_space<vmem>>, vector<1x8x1x1xf32>
    %4 = vector.shape_cast %3 : vector<1x8x1x1xf32> to vector<8x1x1xf32>
    %c1 = arith.constant 1 : index
    %c0_10 = arith.constant 0 : index
    %c0_11 = arith.constant 0 : index
    %c0_12 = arith.constant 0 : index
    %5 = vector.load %arg1[%c1, %c0_10, %c0_11, %c0_12] : memref<5x8x1x1xf32, #tpu.memory_space<vmem>>, vector<1x8x1x1xf32>
    %6 = vector.shape_cast %5 : vector<1x8x1x1xf32> to vector<8x1x1xf32>
    %c2 = arith.constant 2 : index
    %c0_13 = arith.constant 0 : index
    %c0_14 = arith.constant 0 : index
    %c0_15 = arith.constant 0 : index
    %7 = vector.load %arg1[%c2, %c0_13, %c0_14, %c0_15] : memref<5x8x1x1xf32, #tpu.memory_space<vmem>>, vector<1x8x1x1xf32>
    %8 = vector.shape_cast %7 : vector<1x8x1x1xf32> to vector<8x1x1xf32>
    %c3 = arith.constant 3 : index
    %c0_16 = arith.constant 0 : index
    %c0_17 = arith.constant 0 : index
    %c0_18 = arith.constant 0 : index
    %9 = vector.load %arg1[%c3, %c0_16, %c0_17, %c0_18] : memref<5x8x1x1xf32, #tpu.memory_space<vmem>>, vector<1x8x1x1xf32>
    %10 = vector.shape_cast %9 : vector<1x8x1x1xf32> to vector<8x1x1xf32>
    %c4 = arith.constant 4 : index
    %c0_19 = arith.constant 0 : index
    %c0_20 = arith.constant 0 : index
    %c0_21 = arith.constant 0 : index
    %11 = vector.load %arg1[%c4, %c0_19, %c0_20, %c0_21] : memref<5x8x1x1xf32, #tpu.memory_space<vmem>>, vector<1x8x1x1xf32>
    %12 = vector.shape_cast %11 : vector<1x8x1x1xf32> to vector<8x1x1xf32>
    %13 = vector.shape_cast %0 : vector<8x16x16xf32> to vector<128x16xf32>
    %cst = arith.constant dense<0.000000e+00> : vector<128x16xf32>
    %14 = tpu.matmul %13, %1, %cst {dimension_numbers = #tpu.dot_dimension_numbers<[1], [0], [0], [1], [0, 0, 1, 1], [], []>} : vector<128x16xf32>, vector<16x16xf32>, vector<128x16xf32> -> vector<128x16xf32>
    %15 = vector.shape_cast %14 : vector<128x16xf32> to vector<8x16x16xf32>
    %16 = vector.broadcast %4 : vector<8x1x1xf32> to vector<8x16x16xf32>
    %17 = arith.mulf %16, %0 : vector<8x16x16xf32>
    %18 = vector.broadcast %6 : vector<8x1x1xf32> to vector<8x16x16xf32>
    %19 = arith.mulf %18, %15 : vector<8x16x16xf32>
    %20 = arith.addf %17, %19 : vector<8x16x16xf32>
    %21 = vector.shape_cast %2 : vector<16x16xf32> to vector<1x16x16xf32>
    %22 = vector.broadcast %21 : vector<1x16x16xf32> to vector<8x16x16xf32>
    %cst_22 = arith.constant dense<0.000000e+00> : vector<8x16x16xf32>
    %23 = tpu.matmul %22, %20, %cst_22 {dimension_numbers = #tpu.dot_dimension_numbers<[2], [1], [1], [2], [0, 0, 0, 1, 1, 2], [0], [0]>} : vector<8x16x16xf32>, vector<8x16x16xf32>, vector<8x16x16xf32> -> vector<8x16x16xf32>
    %24 = vector.broadcast %12 : vector<8x1x1xf32> to vector<8x16x16xf32>
    %25 = arith.mulf %24, %0 : vector<8x16x16xf32>
    %26 = vector.broadcast %8 : vector<8x1x1xf32> to vector<8x16x16xf32>
    %27 = arith.mulf %26, %20 : vector<8x16x16xf32>
    %28 = arith.addf %25, %27 : vector<8x16x16xf32>
    %29 = vector.broadcast %10 : vector<8x1x1xf32> to vector<8x16x16xf32>
    %30 = arith.mulf %29, %23 : vector<8x16x16xf32>
    %31 = arith.addf %28, %30 : vector<8x16x16xf32>
    %c0_23 = arith.constant 0 : index
    %c0_24 = arith.constant 0 : index
    %c0_25 = arith.constant 0 : index
    %32 = vector.load %arg5[%c0_23, %c0_24, %c0_25] : memref<8x16x16xf32, #tpu.memory_space<vmem>>, vector<8x16x16xf32>
    tpu.vector_store %arg5[%c0_23, %c0_24, %c0_25], %31 {strides = array<i32>} : memref<8x16x16xf32, #tpu.memory_space<vmem>>, vector<8x16x16xf32>,
    return
  }
  func.func @transform_0(%arg0: i32) -> (i32, i32, i32, i32) {
    %c0_i32 = arith.constant 0 : i32
    %c0_i32_0 = arith.constant 0 : i32
    %c0_i32_1 = arith.constant 0 : i32
    %c0_i32_2 = arith.constant 0 : i32
    return %c0_i32, %arg0, %c0_i32_0, %c0_i32_1 : i32, i32, i32, i32
  }
  func.func @transform_1(%arg0: i32) -> (i32, i32, i32) {
    %c0_i32 = arith.constant 0 : i32
    %c0_i32_0 = arith.constant 0 : i32
    %c0_i32_1 = arith.constant 0 : i32
    return %arg0, %c0_i32, %c0_i32_0 : i32, i32, i32
  }
  func.func @transform_2(%arg0: i32) -> (i32, i32) {
    %c0_i32 = arith.constant 0 : i32
    %c0_i32_0 = arith.constant 0 : i32
    %c0_i32_1 = arith.constant 0 : i32
    return %c0_i32, %c0_i32_0 : i32, i32
  }
  func.func @transform_3(%arg0: i32) -> (i32, i32) {
    %c0_i32 = arith.constant 0 : i32
    %c0_i32_0 = arith.constant 0 : i32
    %c0_i32_1 = arith.constant 0 : i32
    return %c0_i32, %c0_i32_0 : i32, i32
  }
  func.func @transform_4(%arg0: i32) -> (i32, i32, i32) {
    %c0_i32 = arith.constant 0 : i32
    %c0_i32_0 = arith.constant 0 : i32
    %c0_i32_1 = arith.constant 0 : i32
    return %arg0, %c0_i32, %c0_i32_0 : i32, i32, i32
  }
}

</mosaic_0001>

<bundles_post_ra>
// kernel: tpu_custom_call.1
= control target key start
LH: loop header
LB: loop body
LE: loop exit
PB: predicated region body
PF: predicated region fallthrough
CT: control target
= control target key end

     0   :  { %9 = vsyncpa [#allocation3], 0  ;;  %s1452_s0 = inlined_call_operand.vmem [shape: f32[5,8,1,1], index: 0, kind: input, shape index: {}]   ;;  %s1453_s1 = inlined_call_operand.hbm [shape: f32[8,16,16], index: 1, kind: input, shape index: {}]   ;;  %s1454_s2 = inlined_call_operand.vmem [shape: f32[16,16], index: 2, kind: input, shape index: {}]   ;;  %s1455_s3 = inlined_call_operand.vmem [shape: f32[16,16], index: 3, kind: input, shape index: {}]   ;;  %s1456_s4 = inlined_call_operand.hbm [shape: f32[8,16,16], index: 4, kind: output, shape index: {}]  }
   0x1   :  { %10 = vsyncpa [#allocation4], 0  ;;  %s17_s17 = sshll.u32 %s1453_s1, 4  ;;  %s975_s18 = smov [#allocation2]   ;;  %s18_s17 = int_to_ptr.hbm [resolvable:$true] %s17_s17 }
   0x2   :  { %s19_s19 = sshll.u32 %s975_s18, 4  ;;  %s976_s20 = smov 128   ;;  %s20_s19 = int_to_ptr.vmem [resolvable:$true] %s19_s19 }
   0x3   :  { %s977_s21 = smov 8  }
   0x4   :  { %25 = dma.hbm_to_vmem [thread:$0]  %s18_s17, 2048, %s20_s19, [#allocation3], %s976_s20, %s976_s20, %s977_s21  }
   0x5   :  { %971 = dma.done.wait [#allocation3], 2048  }
   0x6   :  { %972 = vsyncadd [#allocation3], 4294965248  ;;  %v978_v0 = vmov 0   ;;  %v51_v1 = vld [vmem:[%s1454_s2 + $0x8] sm:$0xff]  ;;  %v884_v3 = vld [vmem:[%s1452_s0 + $0x2] ss:$0 sm:$0xff] }
   0x7   :  { %882 = vset.pattern.permute.xlu2 %v978_v0  ;;  %881 = vset.pattern.permute.xlu1 %v978_v0  ;;  %v883_v2 = vld [vmem:[%s1452_s0 + $0x8] ss:$0 sm:$0xff]  ;;  %v885_v4 = vld [vmem:[%s1452_s0] ss:$0 sm:$0xff]  ;;  %vm98_vm0 = vcmask 130048   ;;  %v1037_v9 = vld [vmem:[#allocation2 + $0x50] sm:$0xff] }
   0x8   :  { %880 = vset.pattern.permute.xlu0 %v978_v0  ;;  %161 = vmatpush.msra.mxu0 %v51_v1  ;;  %v50_v5 = vld [vmem:[%s1454_s2] sm:$0xff]  ;;  %v887_v10 = vld [vmem:[%s1452_s0 + $0x9] ss:$0 sm:$0xff]  ;;  %v1055_v15 = vld [vmem:[#allocation2 + $0x58] sm:$0xff]  ;;  %s792_s2 = sshll.u32 %s1456_s4, 4  ;;  %s793_s2 = int_to_ptr.hbm [resolvable:$true] %s792_s2 }
   0x9   :  { %871 = vmatpush.msra.mxu3 %v51_v1  ;;  %293 = vperm.xlu2 %882, %v883_v2   ;;  %v1026_v6 = vld [vmem:[#allocation2] sm:$0xff]  ;;  %v1049_v13 = vld [vmem:[#allocation2 + $0x8] sm:$0xff]  ;;  %v1074_v20 = vld [vmem:[#allocation2 + $0x10] sm:$0xff] }
   0xa   :  { %870 = vmatpush.msra.mxu2 %v51_v1  ;;  %237 = vperm.xlu1 %881, %v884_v3   ;;  %v1028_v7 = vld [vmem:[#allocation2 + $0x60] sm:$0xff]  ;;  %v1051_v14 = vld [vmem:[#allocation2 + $0x68] sm:$0xff]  ;;  %v1076_v21 = vld [vmem:[#allocation2 + $0x70] sm:$0xff] }
   0xb   :  { %162 = vmatpush.msra.mxu0 %v50_v5  ;;  %229 = vperm.xlu0 %880, %v885_v4   ;;  %v886_v8 = vld [vmem:[%s1452_s0 + $0x3] ss:$0 sm:$0xff]  ;;  %v888_v11 = vld [vmem:[%s1452_s0 + $0x1] ss:$0 sm:$0xff]  ;;  %v889_v16 = vld [vmem:[%s1452_s0 + $0xc] ss:$0 sm:$0xff] }
   0xc   :  { %874 = vmatpush.msra.mxu3 %v50_v5  ;;  %837 = vmatmul.msk.f32.vlgmr.msra.gmra.mxu0 %vm98_vm0, %v1026_v6  ;;  %v1047_v12 = vld [vmem:[#allocation2 + $0x40] sm:$0xff]  ;;  %v890_v17 = vld [vmem:[%s1452_s0 + $0xa] ss:$0 sm:$0xff]  ;;  %v894_v24 = vld [vmem:[%s1452_s0 + $0xb] ss:$0 sm:$0xff] }
   0xd   :  { %849 = vmatmul.msk.f32.vlgmr.msra.gmra.mxu3 %vm98_vm0, %v1028_v7  ;;  %873 = vmatpush.msra.mxu2 %v50_v5  ;;  %v1069_v18 = vld [vmem:[#allocation2 + $0x48] sm:$0xff]  ;;  %v891_v19 = vld [vmem:[%s1452_s0 + $0x4] ss:$0 sm:$0xff]  ;;  %v892_v22 = vld [vmem:[%s1452_s0 + $0x7] ss:$0 sm:$0xff] }
   0xe   :  { %869 = vmatpush.msra.mxu1 %v51_v1  ;;  %847 = vmatmul.msk.f32.vlgmr.msra.gmra.mxu2 %vm98_vm0, %v1037_v9  ;;  %v893_v23 = vld [vmem:[%s1452_s0 + $0x5] ss:$0 sm:$0xff]  ;;  %v1093_v25 = vld [vmem:[#allocation2 + $0x18] sm:$0xff]  ;;  %v895_v27 = vld [vmem:[%s1452_s0 + $0x6] ss:$0 sm:$0xff] }
   0xf   :  { %v1095_v26 = vld [vmem:[#allocation2 + $0x78] sm:$0xff]  ;;  %v896_v28 = vld [vmem:[%s1452_s0 + $0xf] ss:$0 sm:$0xff]  ;;  %v897_v29 = vld [vmem:[%s1452_s0 + $0xd] ss:$0 sm:$0xff] }
  0x10   :  { %872 = vmatpush.msra.mxu1 %v50_v5  ;;  %v1110_v30 = vld [vmem:[#allocation2 + $0x20] sm:$0xff]  ;;  %v900_v33 = vld [vmem:[%s1452_s0 + $0xe] ss:$0 sm:$0xff]  ;;  %v1136_v38 = vld [vmem:[#allocation2 + $0x30] sm:$0xff] }
  0x11   :  { %241 = vperm.xlu2 %882, %v886_v8   ;;  %845 = vmatmul.msk.f32.vlgmr.msra.gmra.mxu1 %vm98_vm0, %v1047_v12  ;;  %v898_v31 = vld [vmem:[%s1452_s0 + $0x21] ss:$0 sm:$0xff]  ;;  %v899_v32 = vld [vmem:[%s1452_s0 + $0x20] ss:$0 sm:$0xff]  ;;  %v1123_v34 = vld [vmem:[#allocation2 + $0x28] sm:$0xff] }
  0x12   :  { %297 = vperm.xlu1 %881, %v887_v10   ;;  %v901_v35 = vld [vmem:[%s1452_s0 + $0x24] ss:$0 sm:$0xff]  ;;  %v902_v36 = vld [vmem:[%s1452_s0 + $0x23] ss:$0 sm:$0xff]  ;;  %v903_v37 = vld [vmem:[%s1452_s0 + $0x22] ss:$0 sm:$0xff] }
  0x13   :  { %233 = vperm.xlu0 %880, %v888_v11   ;;  %v904_v39 = vld [vmem:[%s1452_s0 + $0x27] ss:$0 sm:$0xff]  ;;  %v905_v40 = vld [vmem:[%s1452_s0 + $0x26] ss:$0 sm:$0xff]  ;;  %v906_v41 = vld [vmem:[%s1452_s0 + $0x25] ss:$0 sm:$0xff] }
  0x14   :  { %838 = vmatmul.msk.f32.gmra.mxu0 %vm98_vm0, %v1049_v13  ;;  %v1149_v42 = vld [vmem:[#allocation2 + $0x38] sm:$0xff]  ;;  %v907_v43 = vld [vmem:[%s1452_s0 + $0x12] ss:$0 sm:$0xff]  ;;  %v908_v44 = vld [vmem:[%s1452_s0 + $0x11] ss:$0 sm:$0xff] }
  0x15   :  { %850 = vmatmul.msk.f32.gmra.mxu3 %vm98_vm0, %v1051_v14  ;;  %v909_v45 = vld [vmem:[%s1452_s0 + $0x10] ss:$0 sm:$0xff]  ;;  %v910_v46 = vld [vmem:[%s1452_s0 + $0x15] ss:$0 sm:$0xff]  ;;  %v911_v47 = vld [vmem:[%s1452_s0 + $0x14] ss:$0 sm:$0xff] }
  0x16   :  { %848 = vmatmul.msk.f32.gmra.mxu2 %vm98_vm0, %v1055_v15  ;;  %v912_v48 = vld [vmem:[%s1452_s0 + $0x13] ss:$0 sm:$0xff]  ;;  %v913_v49 = vld [vmem:[%s1452_s0 + $0x18] ss:$0 sm:$0xff]  ;;  %v914_v50 = vld [vmem:[%s1452_s0 + $0x17] ss:$0 sm:$0xff] }
  0x17   :  { %v915_v51 = vld [vmem:[%s1452_s0 + $0x16] ss:$0 sm:$0xff]  ;;  %v916_v52 = vld [vmem:[%s1452_s0 + $0x1b] ss:$0 sm:$0xff]  ;;  %v917_v53 = vld [vmem:[%s1452_s0 + $0x1a] ss:$0 sm:$0xff] }
  0x18   :  { %v918_v54 = vld [vmem:[%s1452_s0 + $0x19] ss:$0 sm:$0xff]  ;;  %v919_v56 = vld [vmem:[%s1452_s0 + $0x1e] ss:$0 sm:$0xff]  ;;  %v920_v57 = vld [vmem:[%s1452_s0 + $0x1d] ss:$0 sm:$0xff] }
  0x19   :  { %309 = vperm.xlu2 %882, %v889_v16   ;;  %846 = vmatmul.msk.f32.gmra.mxu1 %vm98_vm0, %v1069_v18  ;;  %v921_v58 = vld [vmem:[%s1452_s0 + $0x1c] ss:$0 sm:$0xff]  ;;  %v922_v60 = vld [vmem:[%s1452_s0 + $0x1f] ss:$0 sm:$0xff] }
  0x1a   :  { %301 = vperm.xlu1 %881, %v890_v17  }
  0x1b   :  { %245 = vperm.xlu0 %880, %v891_v19  }
  0x1c   :  { %839 = vmatmul.msk.f32.gmra.mxu0 %vm98_vm0, %v1074_v20 }
  0x1d   :  { %851 = vmatmul.msk.f32.gmra.mxu3 %vm98_vm0, %v1076_v21 }
  0x21   :  { %257 = vperm.xlu2 %882, %v892_v22  }
  0x22   :  { %249 = vperm.xlu1 %881, %v893_v23  }
  0x23   :  { %305 = vperm.xlu0 %880, %v894_v24  }
  0x24   :  { %840 = vmatmul.msk.f32.gmra.mxu0 %vm98_vm0, %v1093_v25 }
  0x25   :  { %852 = vmatmul.msk.f32.gmra.mxu3 %vm98_vm0, %v1095_v26 }
  0x29   :  { %253 = vperm.xlu2 %882, %v895_v27  }
  0x2a   :  { %321 = vperm.xlu1 %881, %v896_v28  }
  0x2b   :  { %313 = vperm.xlu0 %880, %v897_v29  }
  0x2c   :  { %841 = vmatmul.msk.f32.gmra.mxu0 %vm98_vm0, %v1110_v30 }
  0x31   :  { %567 = vperm.xlu2 %882, %v898_v31  }
  0x32   :  { %563 = vperm.xlu1 %881, %v899_v32  }
  0x33   :  { %317 = vperm.xlu0 %880, %v900_v33   ;;  %v1229_v33 = vld [vmem:[%s1455_s3] sm:$0xff] }
  0x34   :  { %842 = vmatmul.msk.f32.gmra.mxu0 %vm98_vm0, %v1123_v34 }
  0x39   :  { %579 = vperm.xlu2 %882, %v901_v35  }
  0x3a   :  { %575 = vperm.xlu1 %881, %v902_v36  }
  0x3b   :  { %571 = vperm.xlu0 %880, %v903_v37  }
  0x3c   :  { %843 = vmatmul.msk.f32.gmra.mxu0 %vm98_vm0, %v1136_v38 }
  0x41   :  { %591 = vperm.xlu2 %882, %v904_v39  }
  0x42   :  { %587 = vperm.xlu1 %881, %v905_v40  }
  0x43   :  { %583 = vperm.xlu0 %880, %v906_v41  }
  0x44   :  { %844 = vmatmul.msk.f32.gmra.mxu0 %vm98_vm0, %v1149_v42 }
  0x49   :  { %635 = vperm.xlu2 %882, %v907_v43   ;;  %v1241_v43 = vld [vmem:[%s1455_s3 + $0x8] sm:$0xff]  ;;  %s979_s3 = smov [#allocation5]  }
  0x4a   :  { %631 = vperm.xlu1 %881, %v908_v44   ;;  %s790_s30 = sshll.u32 %s979_s3, 4  ;;  %s791_s30 = int_to_ptr.vmem [resolvable:$true] %s790_s30 }
  0x4b   :  { %627 = vperm.xlu0 %880, %v909_v45  }
  0x51   :  { %647 = vperm.xlu2 %882, %v910_v46  }
  0x52   :  { %643 = vperm.xlu1 %881, %v911_v47  }
  0x53   :  { %639 = vperm.xlu0 %880, %v912_v48  }
  0x59   :  { %707 = vperm.xlu2 %882, %v913_v49  }
  0x5a   :  { %655 = vperm.xlu1 %881, %v914_v50  }
  0x5b   :  { %651 = vperm.xlu0 %880, %v915_v51  }
  0x61   :  { %719 = vperm.xlu2 %882, %v916_v52  }
  0x62   :  { %715 = vperm.xlu1 %881, %v917_v53  }
  0x63   :  { %711 = vperm.xlu0 %880, %v918_v54   ;;  %v294_v55 = vpop.permute.xlu2 %293 }
  0x69   :  { %731 = vperm.xlu2 %882, %v919_v56  }
  0x6a   :  { %727 = vperm.xlu1 %881, %v920_v57  }
  0x6b   :  { %723 = vperm.xlu0 %880, %v921_v58   ;;  %v1198_v59 = vpop.permute.xlu2 %241 }
  0x73   :  { %735 = vperm.xlu0 %880, %v922_v60   ;;  %v310_v61 = vpop.permute.xlu2 %309 }
  0x7b   :  { %v258_v62 = vpop.permute.xlu2 %257 }
  0x7c   :  { %v1203_v63 = vpop.permute.xlu1 %237  ;;  %v275_v57 = vmul.f32 %v258_v62, %v1095_v26 }
  0x7d   :  { %v230_v0 = vpop.permute.xlu0 %229 }
  0x7e   :  { %v261_v16 = vmul.f32 %v230_v0, %v1049_v13  ;;  %v260_v19 = vmul.f32 %v230_v0, %v1026_v6 }
  0x83   :  { %v1205_v1 = vpop.permute.xlu2 %253 }
  0x84   :  { %v298_v2 = vpop.permute.xlu1 %297 }
  0x85   :  { %v234_v3 = vpop.permute.xlu0 %233 }
  0x86   :  { %v263_v46 = vmul.f32 %v234_v3, %v1093_v25  ;;  %v262_v47 = vmul.f32 %v234_v3, %v1074_v20 }
  0x89   :  { %v164_v4 = vpop.f32.mrf.mxu0 }
  0x8a   :  { %v324_v22 = vmul.f32 %v294_v55, %v164_v4 }
  0x8b   :  { %v1207_v5 = vpop.permute.xlu2 %567 }
  0x8c   :  { %v1209_v8 = vpop.permute.xlu1 %301  ;;  %v1224_v32 = vadd.f32 %v324_v22, %v260_v19  ;;  %v274_v22 = vmul.f32 %v258_v62, %v1076_v21 }
  0x8d   :  { %v246_v10 = vpop.permute.xlu0 %245 }
  0x8e   :  { %v188_v31 = vpop.f32.mrf.mxu1  ;;  %v269_v49 = vmul.f32 %v246_v10, %v1069_v18  ;;  %v268_v58 = vmul.f32 %v246_v10, %v1047_v12 }
  0x8f   :  { %v332_v60 = vmul.f32 %v310_v61, %v188_v31 }
  0x90   :  { %v1211_v11 = vpop.f32.mrf.mxu3 }
  0x91   :  { %v167_v17 = vpop.f32.mrf.mxu0  ;;  %v194_v37 = vpop.f32.mrf.mxu2 }
  0x92   :  { %v325_v23 = vmul.f32 %v294_v55, %v167_v17 }
  0x93   :  { %v1215_v24 = vpop.permute.xlu2 %579 }
  0x94   :  { %v1217_v27 = vpop.permute.xlu1 %249  ;;  %v1219_v28 = vadd.f32 %v325_v23, %v261_v16 }
  0x95   :  { %v1221_v29 = vpop.permute.xlu0 %305  ;;  %v271_v3 = vmul.f32 %v1217_v27, %v1055_v15 }
  0x96   :  { %376 = vmatpush.msrb.mxu1 %v1219_v28  ;;  %v191_v45 = vpop.f32.mrf.mxu1 }
  0x97   :  { %v333_v52 = vmul.f32 %v310_v61, %v191_v45  ;;  %v348_v61 = vadd.f32 %v332_v60, %v268_v58  ;;  %v270_v58 = vmul.f32 %v1217_v27, %v1037_v9 }
  0x98   :  { %v1231_v35 = vpop.f32.mrf.mxu3  ;;  %377 = vmatpush.msrb.mxu1 %v1224_v32 }
  0x99   :  { %v170_v36 = vpop.f32.mrf.mxu0  ;;  %853 = vmatmul.msk.f32.vlgmr.msrb.gmra.mxu1 %vm98_vm0, %v1229_v33  ;;  %v197_v53 = vpop.f32.mrf.mxu2  ;;  %v1258_v16 = vadd.f32 %v333_v52, %v269_v49 }
  0x9a   :  { %v326_v50 = vmul.f32 %v298_v2, %v170_v36 }
  0x9b   :  { %v1236_v39 = vpop.permute.xlu2 %591 }
  0x9c   :  { %v322_v40 = vpop.permute.xlu1 %321 }
  0x9d   :  { %v314_v41 = vpop.permute.xlu0 %313 }
  0x9e   :  { %v335_v4 = vmul.f32 %v314_v41, %v197_v53  ;;  %v334_v60 = vmul.f32 %v314_v41, %v194_v37  ;;  %v597_v37 = vmul.f32 %v1207_v5, %v1093_v25  ;;  %v266_v25 = vmul.f32 %v1198_v59, %v1136_v38 }
  0xa0   :  { %v206_v44 = vpop.f32.mrf.mxu3  ;;  %v351_v31 = vadd.f32 %v335_v4, %v271_v3  ;;  %v1308_v27 = vadd.f32 %v334_v60, %v270_v58 }
  0xa1   :  { %v173_v48 = vpop.f32.mrf.mxu0  ;;  %854 = vmatmul.msk.f32.gmra.mxu1 %vm98_vm0, %v1241_v43  ;;  %v338_v23 = vmul.f32 %v322_v40, %v206_v44  ;;  %v265_v44 = vmul.f32 %v1203_v63, %v1123_v34 }
  0xa2   :  { %v327_v51 = vmul.f32 %v298_v2, %v173_v48  ;;  %v1260_v2 = vadd.f32 %v326_v50, %v262_v47 }
  0xa3   :  { %v1248_v54 = vpop.permute.xlu2 %635  ;;  %v1274_v48 = vadd.f32 %v338_v23, %v274_v22  ;;  %v267_v23 = vmul.f32 %v1198_v59, %v1149_v42  ;;  %v272_v59 = vmul.f32 %v1205_v1, %v1028_v7 }
  0xa4   :  { %v1250_v55 = vpop.permute.xlu1 %563  ;;  %v343_v56 = vadd.f32 %v327_v51, %v263_v46  ;;  %v264_v51 = vmul.f32 %v1203_v63, %v1110_v30 }
  0xa5   :  { %v1254_v0 = vpop.permute.xlu0 %317 }
  0xa6   :  { %399 = vmatpush.msrb.mxu2 %v343_v56 }
  0xa8   :  { %v209_v17 = vpop.f32.mrf.mxu3  ;;  %400 = vmatpush.msrb.mxu2 %v1260_v2 }
  0xa9   :  { %v339_v19 = vmul.f32 %v322_v40, %v209_v17  ;;  %v176_v10 = vpop.f32.mrf.mxu0  ;;  %855 = vmatmul.msk.f32.vlgmr.msrb.gmra.mxu2 %vm98_vm0, %v1229_v33 }
  0xaa   :  { %468 = vmatpush.msra.mxu2 %v1258_v16  ;;  %v328_v49 = vmul.f32 %v1209_v8, %v176_v10 }
  0xab   :  { %v1266_v36 = vadd.f32 %v339_v19, %v275_v57  ;;  %v1269_v45 = vpop.permute.xlu2 %647 }
  0xac   :  { %469 = vmatpush.msra.mxu2 %v348_v61  ;;  %v669_v46 = vmul.f32 %v1269_v45, %v351_v31  ;;  %v1272_v47 = vpop.permute.xlu1 %575  ;;  %v1299_v4 = vadd.f32 %v328_v49, %v264_v51  ;;  %v602_v49 = vmul.f32 %v1215_v24, %v1047_v12 }
  0xad   :  { %v1277_v62 = vpop.permute.xlu0 %571 }
  0xae   :  { %537 = vmatpush.msrb.mxu2 %v1266_v36 }
  0xb0   :  { %538 = vmatpush.msrb.mxu2 %v1274_v48 }
  0xb1   :  { %v179_v40 = vpop.f32.mrf.mxu0  ;;  %856 = vmatmul.msk.f32.gmra.mxu2 %vm98_vm0, %v1241_v43 }
  0xb2   :  { %v329_v50 = vmul.f32 %v1209_v8, %v179_v40 }
  0xb4   :  { %v1288_v52 = vpop.permute.xlu1 %587  ;;  %v1290_v53 = vadd.f32 %v329_v50, %v265_v44  ;;  %v603_v50 = vmul.f32 %v1215_v24, %v1069_v18  ;;  %v608_v24 = vmul.f32 %v1236_v39, %v1076_v21  ;;  %v594_v21 = vmul.f32 %v1250_v55, %v1026_v6 }
  0xb5   :  { %v1292_v57 = vpop.permute.xlu0 %583 }
  0xb6   :  { %v605_v3 = vmul.f32 %v1292_v57, %v1055_v15  ;;  %422 = vmatpush.msrb.mxu3 %v1290_v53 }
  0xb8   :  { %v1301_v8 = vadd.f32 %v669_v46, %v605_v3  ;;  %423 = vmatpush.msrb.mxu3 %v1299_v4  ;;  %v337_v46 = vmul.f32 %v1254_v0, %v1231_v35  ;;  %v336_v35 = vmul.f32 %v1254_v0, %v1211_v11  ;;  %v609_v0 = vmul.f32 %v1236_v39, %v1095_v26  ;;  %v708_v26 = vpop.permute.xlu2 %707 }
  0xb9   :  { %v182_v63 = vpop.f32.mrf.mxu0  ;;  %857 = vmatmul.msk.f32.vlgmr.msrb.gmra.mxu3 %vm98_vm0, %v1229_v33  ;;  %861 = vmatmul.msk.f32.vlgmr.msra.gmra.mxu2 %vm98_vm0, %v1229_v33 }
  0xba   :  { %491 = vmatpush.msra.mxu3 %v351_v31  ;;  %v330_v10 = vmul.f32 %v1221_v29, %v182_v63 }
  0xbc   :  { %492 = vmatpush.msra.mxu3 %v1308_v27  ;;  %v1311_v15 = vpop.permute.xlu1 %631  ;;  %v1345_v60 = vadd.f32 %v330_v10, %v266_v25 }
  0xbd   :  { %v661_v41 = vmul.f32 %v1311_v15, %v343_v56  ;;  %v628_v17 = vpop.permute.xlu0 %627  ;;  %v273_v56 = vmul.f32 %v1205_v1, %v1051_v14  ;;  %v1357_v1 = vadd.f32 %v336_v35, %v272_v59  ;;  %v660_v6 = vmul.f32 %v1311_v15, %v1260_v2 }
  0xbe   :  { %v659_v25 = vmul.f32 %v628_v17, %v1219_v28  ;;  %v598_v59 = vmul.f32 %v1277_v62, %v1110_v30  ;;  %v662_v2 = vmul.f32 %v1248_v54, %v1299_v4  ;;  %v599_v30 = vmul.f32 %v1277_v62, %v1123_v34 }
  0xbf   :  { %v1316_v19 = vadd.f32 %v661_v41, %v597_v37  ;;  %v353_v18 = vadd.f32 %v337_v46, %v273_v56  ;;  %v607_v37 = vmul.f32 %v1288_v52, %v1051_v14  ;;  %v658_v14 = vmul.f32 %v628_v17, %v1224_v32 }
  0xc0   :  { %v596_v32 = vmul.f32 %v1207_v5, %v1074_v20  ;;  %v604_v34 = vmul.f32 %v1292_v57, %v1037_v9 }
  0xc1   :  { %v185_v22 = vpop.f32.mrf.mxu0  ;;  %858 = vmatmul.msk.f32.gmra.mxu3 %vm98_vm0, %v1241_v43  ;;  %862 = vmatmul.msk.f32.gmra.mxu2 %vm98_vm0, %v1241_v43 }
  0xc2   :  { %v331_v31 = vmul.f32 %v1221_v29, %v185_v22  ;;  %v676_v28 = vadd.f32 %v660_v6, %v596_v32 }
  0xc4   :  { %v1332_v40 = vadd.f32 %v331_v31, %v267_v23  ;;  %v644_v44 = vpop.permute.xlu1 %643 }
  0xc5   :  { %v666_v51 = vmul.f32 %v644_v44, %v348_v61  ;;  %v667_v29 = vmul.f32 %v644_v44, %v1258_v16  ;;  %v1339_v58 = vpop.permute.xlu0 %639 }
  0xc6   :  { %445 = vmatpush.msra.mxu1 %v1332_v40  ;;  %v664_v4 = vmul.f32 %v1339_v58, %v1345_v60 }
  0xc7   :  { %v1348_v3 = vadd.f32 %v666_v51, %v602_v49  ;;  %v1350_v12 = vadd.f32 %v667_v29, %v603_v50 }
  0xc8   :  { %446 = vmatpush.msra.mxu1 %v1345_v60  ;;  %v665_v60 = vmul.f32 %v1339_v58, %v1332_v40 }
  0xc9   :  { %859 = vmatmul.msk.f32.vlgmr.msra.gmra.mxu1 %vm98_vm0, %v1229_v33  ;;  %863 = vmatmul.msk.f32.vlgmr.msra.gmra.mxu3 %vm98_vm0, %v1229_v33 }
  0xca   :  { %514 = vmatpush.msrb.mxu1 %v353_v18  ;;  %867 = vmatmul.msk.f32.vlgmr.msrb.gmra.mxu2 %vm98_vm0, %v1229_v33 }
  0xcc   :  { %515 = vmatpush.msrb.mxu1 %v1357_v1  ;;  %v656_v11 = vpop.permute.xlu1 %655 }
  0xcd   :  { %v672_v16 = vmul.f32 %v656_v11, %v1274_v48  ;;  %v673_v61 = vmul.f32 %v656_v11, %v1266_v36  ;;  %v1368_v63 = vpop.permute.xlu0 %651  ;;  %v674_v36 = vadd.f32 %v658_v14, %v594_v21 }
  0xce   :  { %v671_v41 = vmul.f32 %v1368_v63, %v353_v18  ;;  %v678_v18 = vadd.f32 %v662_v2, %v598_v59  ;;  %v670_v40 = vmul.f32 %v1368_v63, %v1357_v1 }
  0xcf   :  { %v1373_v22 = vadd.f32 %v672_v16, %v608_v24  ;;  %v1375_v23 = vadd.f32 %v673_v61, %v609_v0 }
  0xd0   :  { %v1377_v10 = vadd.f32 %v671_v41, %v607_v37  ;;  %v600_v41 = vmul.f32 %v1272_v47, %v1136_v38  ;;  %v668_v38 = vmul.f32 %v1269_v45, %v1308_v27 }
  0xd1   :  { %860 = vmatmul.msk.f32.gmra.mxu1 %vm98_vm0, %v1241_v43  ;;  %864 = vmatmul.msk.f32.gmra.mxu3 %vm98_vm0, %v1241_v43 }
  0xd2   :  { %868 = vmatmul.msk.f32.gmra.mxu2 %vm98_vm0, %v1241_v43 }
  0xd4   :  { %v716_v20 = vpop.permute.xlu1 %715 }
  0xd5   :  { %v712_v49 = vpop.permute.xlu0 %711 }
  0xd9   :  { %865 = vmatmul.msk.f32.vlgmr.msrb.gmra.mxu1 %vm98_vm0, %v1229_v33  ;;  %v595_v33 = vmul.f32 %v1250_v55, %v1049_v13 }
  0xdb   :  { %v675_v46 = vadd.f32 %v659_v25, %v595_v33  ;;  %v684_v33 = vadd.f32 %v668_v38, %v604_v34 }
  0xdd   :  { %v724_v5 = vpop.permute.xlu0 %723 }
  0xe1   :  { %866 = vmatmul.msk.f32.gmra.mxu1 %vm98_vm0, %v1241_v43 }
  0xe5   :  { %v736_v9 = vpop.permute.xlu0 %735 }
 0x116   :  { %v379_v39 = vpop.f32.mrf.mxu1 }
 0x117   :  { %v738_v48 = vmul.f32 %v708_v26, %v379_v39 }
 0x119   :  { %v754_v31 = vadd.f32 %v738_v48, %v674_v36 }
 0x11b   :  { %770 = vst.msk [vmem:[#allocation5] sm:$0xff] %vm98_vm0, %v754_v31  ;;  %v728_v31 = vpop.permute.xlu1 %727 }
 0x11e   :  { %v382_v56 = vpop.f32.mrf.mxu1 }
 0x11f   :  { %v739_v43 = vmul.f32 %v708_v26, %v382_v56  ;;  %v720_v26 = vpop.permute.xlu2 %719 }
 0x121   :  { %v755_v44 = vadd.f32 %v739_v43, %v675_v46 }
 0x123   :  { %771 = vst.msk [vmem:[#allocation5 + $0x8] sm:$0xff] %vm98_vm0, %v755_v44 }
 0x12c   :  { %v402_v50 = vpop.f32.mrf.mxu2 }
 0x12d   :  { %v740_v17 = vmul.f32 %v712_v49, %v402_v50  ;;  %v732_v50 = vpop.permute.xlu2 %731 }
 0x12f   :  { %v756_v51 = vadd.f32 %v740_v17, %v676_v28 }
 0x131   :  { %772 = vst.msk [vmem:[#allocation5 + $0x10] sm:$0xff] %vm98_vm0, %v756_v51 }
 0x134   :  { %v405_v13 = vpop.f32.mrf.mxu2 }
 0x135   :  { %v741_v55 = vmul.f32 %v712_v49, %v405_v13 }
 0x137   :  { %v757_v29 = vadd.f32 %v741_v55, %v1316_v19  ;;  %v663_v19 = vmul.f32 %v1248_v54, %v1290_v53  ;;  %v680_v53 = vadd.f32 %v664_v4, %v600_v41 }
 0x139   :  { %773 = vst.msk [vmem:[#allocation5 + $0x18] sm:$0xff] %vm98_vm0, %v757_v29  ;;  %v679_v14 = vadd.f32 %v663_v19, %v599_v30 }
 0x13c   :  { %v425_v15 = vpop.f32.mrf.mxu3  ;;  %v471_v35 = vpop.f32.mrf.mxu2 }
 0x13d   :  { %v742_v11 = vmul.f32 %v716_v20, %v425_v15  ;;  %v746_v24 = vmul.f32 %v724_v5, %v471_v35 }
 0x13f   :  { %v758_v0 = vadd.f32 %v742_v11, %v678_v18  ;;  %v762_v16 = vadd.f32 %v746_v24, %v1348_v3 }
 0x141   :  { %774 = vst.msk [vmem:[#allocation5 + $0x20] sm:$0xff] %vm98_vm0, %v758_v0 }
 0x142   :  { %778 = vst.msk [vmem:[#allocation5 + $0x40] sm:$0xff] %vm98_vm0, %v762_v16 }
 0x144   :  { %v428_v61 = vpop.f32.mrf.mxu3  ;;  %v474_v37 = vpop.f32.mrf.mxu2 }
 0x145   :  { %v743_v3 = vmul.f32 %v716_v20, %v428_v61  ;;  %v747_v21 = vmul.f32 %v724_v5, %v474_v37 }
 0x146   :  { %v448_v54 = vpop.f32.mrf.mxu1 }
 0x147   :  { %v759_v39 = vadd.f32 %v743_v3, %v679_v14  ;;  %v763_v36 = vadd.f32 %v747_v21, %v1350_v12  ;;  %v744_v48 = vmul.f32 %v720_v26, %v448_v54  ;;  %v601_v12 = vmul.f32 %v1272_v47, %v1149_v42 }
 0x148   :  { %v606_v47 = vmul.f32 %v1288_v52, %v1028_v7 }
 0x149   :  { %775 = vst.msk [vmem:[#allocation5 + $0x28] sm:$0xff] %vm98_vm0, %v759_v39  ;;  %v760_v62 = vadd.f32 %v744_v48, %v680_v53  ;;  %v681_v44 = vadd.f32 %v665_v60, %v601_v12 }
 0x14a   :  { %779 = vst.msk [vmem:[#allocation5 + $0x48] sm:$0xff] %vm98_vm0, %v763_v36 }
 0x14b   :  { %776 = vst.msk [vmem:[#allocation5 + $0x30] sm:$0xff] %vm98_vm0, %v760_v62 }
 0x14c   :  { %v494_v25 = vpop.f32.mrf.mxu3 }
 0x14d   :  { %v748_v57 = vmul.f32 %v728_v31, %v494_v25  ;;  %v540_v56 = vpop.f32.mrf.mxu2 }
 0x14e   :  { %v752_v46 = vmul.f32 %v736_v9, %v540_v56  ;;  %v451_v43 = vpop.f32.mrf.mxu1 }
 0x14f   :  { %v764_v6 = vadd.f32 %v748_v57, %v684_v33  ;;  %v745_v32 = vmul.f32 %v720_v26, %v451_v43 }
 0x150   :  { %v768_v45 = vadd.f32 %v752_v46, %v1373_v22  ;;  %v686_v22 = vadd.f32 %v670_v40, %v606_v47 }
 0x151   :  { %780 = vst.msk [vmem:[#allocation5 + $0x50] sm:$0xff] %vm98_vm0, %v764_v6  ;;  %v761_v27 = vadd.f32 %v745_v32, %v681_v44 }
 0x152   :  { %784 = vst.msk [vmem:[#allocation5 + $0x70] sm:$0xff] %vm98_vm0, %v768_v45 }
 0x153   :  { %777 = vst.msk [vmem:[#allocation5 + $0x38] sm:$0xff] %vm98_vm0, %v761_v27 }
 0x154   :  { %v497_v42 = vpop.f32.mrf.mxu3 }
 0x155   :  { %v749_v58 = vmul.f32 %v728_v31, %v497_v42  ;;  %v543_v49 = vpop.f32.mrf.mxu2 }
 0x156   :  { %v753_v28 = vmul.f32 %v736_v9, %v543_v49  ;;  %v517_v17 = vpop.f32.mrf.mxu1 }
 0x157   :  { %v765_v51 = vadd.f32 %v749_v58, %v1301_v8  ;;  %v750_v13 = vmul.f32 %v732_v50, %v517_v17 }
 0x158   :  { %v769_v55 = vadd.f32 %v753_v28, %v1375_v23 }
 0x159   :  { %781 = vst.msk [vmem:[#allocation5 + $0x58] sm:$0xff] %vm98_vm0, %v765_v51  ;;  %v766_v1 = vadd.f32 %v750_v13, %v686_v22 }
 0x15a   :  { %785 = vst.msk [vmem:[#allocation5 + $0x78] sm:$0xff] %vm98_vm0, %v769_v55 }
 0x15b   :  { %782 = vst.msk [vmem:[#allocation5 + $0x60] sm:$0xff] %vm98_vm0, %v766_v1 }
 0x15e   :  { %v520_v63 = vpop.f32.mrf.mxu1 }
 0x15f   :  { %v751_v7 = vmul.f32 %v732_v50, %v520_v63 }
 0x161   :  { %v767_v52 = vadd.f32 %v751_v7, %v1377_v10 }
 0x163   :  { %783 = vst.msk [vmem:[#allocation5 + $0x68] sm:$0xff] %vm98_vm0, %v767_v52 }
 0x164   :  { %798 = dma.vmem_to_hbm [thread:$0]  %s791_s30, 2048, %s793_s2, [#allocation4], %s976_s20, %s976_s20, %s977_s21  }
 0x165   :  { %973 = dma.done.wait [#allocation4], 2048  }
 0x166   :  { %974 = vsyncadd [#allocation4], 4294965248 }
 0x167   :  { %803 = vsyncpa [#allocation3], 1 }
 0x168   :  { %804 = vsyncpa [#allocation4], 1 }

</bundles_post_ra>
